<compile_context>
chip_gen: v7x
topology: tpu7x:2x2x1
jax: 0.10.0
libtpu: 0.0.40
codegen_flags: <defaults>
</compile_context>

<pallas_src>
import jax
import jax.numpy as jnp
from jax.experimental import pallas as pl
from jax.experimental.pallas import tpu as pltpu


# ------------------------------ fused kernel -------------------------------- #

def _decoder_step_kernel(tok_ref,        # (B,)            int32, SMEM
                         emb_ref,        # (V, E)   f32    HBM (pl.ANY)
                         w_ref,          # (1, Dmax+H, 4H) bf16   layer tile [W_ih; W_hh]
                         b_ref,          # (1, 1, 4H)      bf16   layer tile (b_ih + b_hh)
                         wout_ref,       # (H, TV)         bf16   vocab tile
                         bout_ref,       # (1, TV)         bf16   vocab tile
                         state_in_ref,   # (2L, B, H) f32  resident (h: [0:L], c: [L:2L])
                         logits_ref,     # (B, TV)    f32  vocab tile
                         state_out_ref,  # (2L, B, H) f32  resident, aliased w/ state_in
                         x_ref,          # (B, Dmax)  f32  VMEM scratch: layer-input carry
                         sem_ref):       # (B,) DMA semaphores for the row gather
    step = pl.program_id(0)
    B, dmax = x_ref.shape
    _, E = emb_ref.shape
    two_l, _, H = state_in_ref.shape
    L = two_l // 2

    # ---- phase 0 (grid step 0): gather the B embedding rows into the x carry ----
    @pl.when(step == 0)
    def _gather():
        if E < dmax:                       # keep pad lanes zero (x is zero-padded)
            x_ref[:, E:] = jnp.zeros((B, dmax - E), x_ref.dtype)
        copies = []
        for b in range(B):
            if E == dmax:
                dst = x_ref.at[pl.ds(b, 1)]
            else:
                dst = x_ref.at[pl.ds(b, 1), pl.ds(0, E)]
            cp = pltpu.make_async_copy(emb_ref.at[pl.ds(tok_ref[b], 1)], dst,
                                       sem_ref.at[b])
            cp.start()
            copies.append(cp)
        for cp in copies:                  # all B row-DMAs in flight, then drain
            cp.wait()
        # dropout(embedded) == identity (eval mode)

    # ---- phase 1 (grid steps 0..L-1): one LSTM cell per grid step ----
    @pl.when(step < L)
    def _layer():
        l = step
        w_ih = w_ref[0, :dmax, :]                       # (Dmax, 4H) bf16
        w_hh = w_ref[0, dmax:, :]                       # (H, 4H)    bf16
        bias = b_ref[0].astype(jnp.float32)             # (1, 4H)
        x = x_ref[...].astype(jnp.bfloat16)             # (B, Dmax)
        h_prev = state_in_ref[l]                        # (B, H) f32
        c_prev = state_in_ref[L + l]                    # (B, H) f32

        # two accumulating MXU dots (no [x, h] concatenate, no padded K waste)
        gates = (jnp.dot(x, w_ih, preferred_element_type=jnp.float32)
                 + jnp.dot(h_prev.astype(jnp.bfloat16), w_hh,
                           preferred_element_type=jnp.float32)
                 + bias)                                 # (B, 4H), gate order i, f, o | g

        sig = jax.nn.sigmoid(gates[:, :3 * H])           # i, f, o  (3H lanes on EUP)
        g = jnp.tanh(gates[:, 3 * H:])                   # g        (H lanes)
        i_g = sig[:, 0 * H:1 * H]
        f_g = sig[:, 1 * H:2 * H]
        o_g = sig[:, 2 * H:3 * H]

        c_new = f_g * c_prev + i_g * g                   # f32 cell state
        h_new = o_g * jnp.tanh(c_new)

        state_out_ref[l] = h_new                         # resident block; one dense
        state_out_ref[L + l] = c_new                     # HBM writeback at grid end

        if H < dmax:                                     # keep pad lanes zero
            x_ref[:, H:] = jnp.zeros((B, dmax - H), x_ref.dtype)
        x_ref[:, :H] = h_new                             # carry to next layer / projection
        # inter-layer dropout == identity (eval mode)

    # ---- phase 2 (grid steps L..L+NV-1): vocab-tiled output projection ----
    @pl.when(step >= L)
    def _project():
        h_top = x_ref[:, :H].astype(jnp.bfloat16)        # (B, H)
        logits = (jnp.dot(h_top, wout_ref[...], preferred_element_type=jnp.float32)
                  + bout_ref[...].astype(jnp.float32))
        logits_ref[...] = logits                         # lane-dense (B, TV) store


# ------------------------------ host wrappers -------------------------------- #

def _reorder_gates(w, H):
    """PyTorch LSTM gate order (i, f, g, o) -> kernel order (i, f, o, g), last axis."""
    return jnp.concatenate(
        [w[..., 0 * H:2 * H], w[..., 3 * H:4 * H], w[..., 2 * H:3 * H]], axis=-1)


def pack_decoder_params(params, emb_dim, hid_dim, n_layers):
    """One-time prep: stack per-layer LSTM weights into (L, max(E,H)+H, 4H) bf16,
    reorder gate columns to [i, f, o, g], cast dense weights/biases to bf16."""
    dmax = max(emb_dim, hid_dim)
    w = jnp.zeros((n_layers, dmax + hid_dim, 4 * hid_dim), jnp.float32)
    for l in range(n_layers):
        in_dim = emb_dim if l == 0 else hid_dim
        w = w.at[l, :in_dim, :].set(_reorder_gates(params["w_ih"][l], hid_dim))
        w = w.at[l, dmax:, :].set(_reorder_gates(params["w_hh"][l], hid_dim))
    b = _reorder_gates(jnp.stack(params["b"], axis=0), hid_dim)      # (L, 1, 4H)
    return {
        "embedding": params["embedding"].astype(jnp.float32),  # gathered per-row; f32 rows
        "w": w.astype(jnp.bfloat16),
        "b": b.astype(jnp.bfloat16),
        "w_out": params["w_out"].astype(jnp.bfloat16),
        "b_out": params["b_out"].astype(jnp.bfloat16),
    }


def _vocab_tile(V):
    if V <= 512:
        return V
    if V % 512 == 0:
        return 512
    if V % 128 == 0:
        return 128
    return V


@jax.jit
def decoder_step(packed, tokens, hidden, cell):
    """Fused equivalent of Decoder.forward(input, hidden, cell) for seq_len == 1.

    tokens: (B,) int ; hidden/cell: (L, B, H) f32
    returns: prediction (B, V) f32, hidden (L, B, H), cell (L, B, H)
    """
    B = tokens.shape[0]
    L, _, H = hidden.shape
    V, E = packed["embedding"].shape
    dmax = packed["w"].shape[1] - H
    TV = _vocab_tile(V)
    NV = V // TV
    grid = (L + NV,)

    state = jnp.concatenate([hidden, cell], axis=0).astype(jnp.float32)  # (2L, B, H)
    tok = tokens.astype(jnp.int32)

    # Clamped index maps: the layer-weight tile only advances during the layer phase,
    # the vocab tile only during the projection phase (no redundant re-fetches).
    layer_idx = lambda i: jnp.minimum(i, L - 1)
    vocab_idx = lambda i: jnp.maximum(i - L, 0)

    in_specs = [
        pl.BlockSpec(memory_space=pltpu.MemorySpace.SMEM),                 # token ids
        pl.BlockSpec(memory_space=pl.ANY),                                 # embedding (HBM)
        pl.BlockSpec((1, dmax + H, 4 * H), lambda i: (layer_idx(i), 0, 0)),  # layer weights
        pl.BlockSpec((1, 1, 4 * H), lambda i: (layer_idx(i), 0, 0)),         # layer bias
        pl.BlockSpec((H, TV), lambda i: (0, vocab_idx(i))),                  # W_out tile
        pl.BlockSpec((1, TV), lambda i: (0, vocab_idx(i))),                  # b_out tile
        pl.BlockSpec((2 * L, B, H), lambda i: (0, 0, 0)),                    # packed state
    ]
    out_specs = (
        pl.BlockSpec((B, TV), lambda i: (0, vocab_idx(i))),                  # logits tile
        pl.BlockSpec((2 * L, B, H), lambda i: (0, 0, 0)),                    # new state
    )

    flops = (L * (2 * B * dmax * 4 * H + 2 * B * H * 4 * H + 10 * B * H)
             + 2 * B * H * V + B * V)
    transcendentals = L * B * 5 * H
    bytes_accessed = (B * 4                                    # token ids
                      + B * E * 4                              # gathered embedding rows
                      + L * ((dmax + H) * 4 * H + 4 * H) * 2   # bf16 layer weights + bias
                      + (H * V + V) * 2                        # bf16 W_out + b_out
                      + 2 * (2 * L * B * H * 4)                # state in + out
                      + B * V * 4)                             # logits
    cost = pl.CostEstimate(flops=flops, transcendentals=transcendentals,
                           bytes_accessed=bytes_accessed)

    logits, new_state = pl.pallas_call(
        _decoder_step_kernel,
        grid=grid,
        in_specs=in_specs,
        out_specs=out_specs,
        out_shape=(jax.ShapeDtypeStruct((B, V), jnp.float32),
                   jax.ShapeDtypeStruct((2 * L, B, H), jnp.float32)),
        scratch_shapes=[pltpu.VMEM((B, dmax), jnp.float32),    # x carry (emb / layer out)
                        pltpu.SemaphoreType.DMA((B,))],        # row-gather semaphores
        input_output_aliases={6: 1},                           # in-place state update
        compiler_params=pltpu.CompilerParams(
            dimension_semantics=("arbitrary",),
            vmem_limit_bytes=48 * 1024 * 1024),
        cost_estimate=cost,
    )(tok, packed["embedding"], packed["w"], packed["b"],
      packed["w_out"], packed["b_out"], state)

    return logits, new_state[:L], new_state[L:]


# ------------------------------ parameter init ------------------------------- #

def init_decoder_params(key, output_dim, emb_dim, hid_dim, n_layers,
                        dtype=jnp.float32):
    """Deterministic parameter init mirroring the nn.Module's parameter shapes.

    LSTM weights stored transposed vs. PyTorch: W_ih (in_dim, 4H), W_hh (H, 4H);
    b = b_ih + b_hh (combined; init distribution differs slightly from PyTorch).
    Gate order i, f, g, o matches PyTorch."""
    keys = jax.random.split(key, 3 + 3 * n_layers)
    k = 1.0 / jnp.sqrt(hid_dim)
    params = {
        "embedding": jax.random.normal(keys[0], (output_dim, emb_dim), dtype) * 0.1,
        "w_out": jax.random.uniform(keys[1], (hid_dim, output_dim), dtype, -k, k),
        "b_out": jax.random.uniform(keys[2], (1, output_dim), dtype, -k, k),
        "w_ih": [], "w_hh": [], "b": [],
    }
    for l in range(n_layers):
        in_dim = emb_dim if l == 0 else hid_dim
        params["w_ih"].append(
            jax.random.uniform(keys[3 + 3 * l], (in_dim, 4 * hid_dim), dtype, -k, k))
        params["w_hh"].append(
            jax.random.uniform(keys[4 + 3 * l], (hid_dim, 4 * hid_dim), dtype, -k, k))
        params["b"].append(
            jax.random.uniform(keys[5 + 3 * l], (1, 4 * hid_dim), dtype, -k, k))
    return params


# ----------------------------- pure-JAX reference ---------------------------- #

def decoder_forward_ref(params, tokens, hidden, cell, n_layers):
    """Reference with the same bf16 weight / matmul-input rounding as the kernel."""
    bf = lambda a: a.astype(jnp.bfloat16)
    H = hidden.shape[-1]
    x = jnp.take(params["embedding"].astype(jnp.float32), tokens, axis=0)
    new_h, new_c = [], []
    for l in range(n_layers):
        gates = (jnp.dot(bf(x), bf(params["w_ih"][l]), preferred_element_type=jnp.float32)
                 + jnp.dot(bf(hidden[l]), bf(params["w_hh"][l]),
                           preferred_element_type=jnp.float32)
                 + bf(params["b"][l]).astype(jnp.float32))
        i = jax.nn.sigmoid(gates[:, 0 * H:1 * H])
        f = jax.nn.sigmoid(gates[:, 1 * H:2 * H])
        g = jnp.tanh(gates[:, 2 * H:3 * H])
        o = jax.nn.sigmoid(gates[:, 3 * H:4 * H])
        c_l = f * cell[l] + i * g
        h_l = o * jnp.tanh(c_l)
        new_h.append(h_l); new_c.append(c_l)
        x = h_l
    pred = (jnp.dot(bf(x), bf(params["w_out"]), preferred_element_type=jnp.float32)
            + bf(params["b_out"]).astype(jnp.float32))
    return pred, jnp.stack(new_h), jnp.stack(new_c)


# ----------------------------------- main ------------------------------------ #

if __name__ == "__main__":
    # Lane/sublane-friendly demo sizes: batch=8 (sublane), 4*hid=128 and vocab=128.
    output_dim = 128   # vocab size
    emb_dim = 32
    hid_dim = 32
    n_layers = 2
    batch = 8

    key = jax.random.PRNGKey(0)
    k_param, k_tok, k_h, k_c = jax.random.split(key, 4)

    params = init_decoder_params(k_param, output_dim, emb_dim, hid_dim, n_layers)
    tokens = jax.random.randint(k_tok, (batch,), 0, output_dim, dtype=jnp.int32)
    hidden = jax.random.normal(k_h, (n_layers, batch, hid_dim), jnp.float32)
    cell = jax.random.normal(k_c, (n_layers, batch, hid_dim), jnp.float32)

    # Pure-JAX reference (same bf16 rounding as the kernel, original gate order).
    pred_r, h_r, c_r = decoder_forward_ref(params, tokens, hidden, cell, n_layers)

    packed = pack_decoder_params(params, emb_dim, hid_dim, n_layers)  # one-time prep
    pred, h_new, c_new = decoder_step(packed, tokens, hidden, cell)
    jax.block_until_ready((pred, h_new, c_new))

    assert pred.shape == (batch, output_dim)
    assert h_new.shape == (n_layers, batch, hid_dim)
    assert c_new.shape == (n_layers, batch, hid_dim)
    assert jnp.allclose(pred, pred_r, atol=5e-3, rtol=5e-3)
    assert jnp.allclose(h_new, h_r, atol=5e-3, rtol=5e-3)
    assert jnp.allclose(c_new, c_r, atol=5e-3, rtol=5e-3)

    print("KERNEL_OK")
</pallas_src>

<mosaic_0001>
module attributes {stable_mosaic.version = 11 : i64} {
  func.func @_decoder_step_kernel(%arg0: i32, %arg1: memref<8xi32, #tpu.memory_space<smem>>, %arg2: memref<128x32xf32, #tpu.memory_space<any>>, %arg3: memref<1x64x128xbf16, #tpu.memory_space<vmem>>, %arg4: memref<1x1x128xbf16, #tpu.memory_space<vmem>>, %arg5: memref<32x128xbf16, #tpu.memory_space<vmem>>, %arg6: memref<1x128xbf16, #tpu.memory_space<vmem>>, %arg7: memref<4x8x32xf32, #tpu.memory_space<vmem>>, %arg8: memref<8x128xf32, #tpu.memory_space<vmem>>, %arg9: memref<4x8x32xf32, #tpu.memory_space<vmem>>, %arg10: memref<8x32xf32, #tpu.memory_space<vmem>>, %arg11: memref<8x!tpu.dma_semaphore, #tpu.memory_space<semaphore_mem>>) attributes {dimension_semantics = [#tpu.dimension_semantics<arbitrary>], iteration_bounds = array<i64: 3>, scalar_prefetch = 0 : i64, scratch_operands = 2 : i64, tpu.core_type = #tpu.core_type<tc>, window_params = [{transform_indices = @transform_0, window_bounds = array<i64: 8>}, {}, {transform_indices = @transform_2, window_bounds = array<i64: 1, 64, 128>}, {transform_indices = @transform_3, window_bounds = array<i64: 1, 1, 128>}, {transform_indices = @transform_4, window_bounds = array<i64: 32, 128>}, {transform_indices = @transform_5, window_bounds = array<i64: 1, 128>}, {pipeline_mode = #tpu.pipeline_mode<synchronous>, transform_indices = @transform_6, window_bounds = array<i64: 4, 8, 32>}, {transform_indices = @transform_7, window_bounds = array<i64: 8, 128>}, {pipeline_mode = #tpu.pipeline_mode<synchronous>, transform_indices = @transform_8, window_bounds = array<i64: 4, 8, 32>}]} {
    %c0_i32 = arith.constant 0 : i32
    %0 = arith.cmpi eq, %arg0, %c0_i32 : i32
    %1 = arith.extui %0 : i1 to i32
    %c0_i32_0 = arith.constant 0 : i32
    %2 = arith.cmpi ne, %1, %c0_i32_0 : i32
    scf.if %2 {
      %c0 = arith.constant 0 : index
      %9 = memref.load %arg1[%c0] : memref<8xi32, #tpu.memory_space<smem>>
      %c0_i32_4 = arith.constant 0 : i32
      %c0_i32_5 = arith.constant 0 : i32
      %10 = tpu.memref_slice %arg2[%9, %c0_i32_5] : memref<128x32xf32, #tpu.memory_space<any>> -> memref<1x32xf32, #tpu.memory_space<any>>
      %c0_i32_6 = arith.constant 0 : i32
      %c0_i32_7 = arith.constant 0 : i32
      %11 = tpu.memref_slice %arg10[%c0_i32_6, %c0_i32_7] : memref<8x32xf32, #tpu.memory_space<vmem>> -> memref<1x32xf32, #tpu.memory_space<vmem>>
      %12 = tpu.memref_slice %arg11[%c0_i32_4] : memref<8x!tpu.dma_semaphore, #tpu.memory_space<semaphore_mem>> -> memref<1x!tpu.dma_semaphore, #tpu.memory_space<semaphore_mem>>
      %13 = tpu.memref_squeeze %12 : memref<1x!tpu.dma_semaphore, #tpu.memory_space<semaphore_mem>> -> memref<!tpu.dma_semaphore, #tpu.memory_space<semaphore_mem>>
      tpu.enqueue_dma source(%10 : memref<1x32xf32, #tpu.memory_space<any>>) target(%11 : memref<1x32xf32, #tpu.memory_space<vmem>>) target_semaphore(%13 : memref<!tpu.dma_semaphore, #tpu.memory_space<semaphore_mem>>)
      %c1 = arith.constant 1 : index
      %14 = memref.load %arg1[%c1] : memref<8xi32, #tpu.memory_space<smem>>
      %c1_i32 = arith.constant 1 : i32
      %c0_i32_8 = arith.constant 0 : i32
      %15 = tpu.memref_slice %arg2[%14, %c0_i32_8] : memref<128x32xf32, #tpu.memory_space<any>> -> memref<1x32xf32, #tpu.memory_space<any>>
      %c1_i32_9 = arith.constant 1 : i32
      %c0_i32_10 = arith.constant 0 : i32
      %16 = tpu.memref_slice %arg10[%c1_i32_9, %c0_i32_10] : memref<8x32xf32, #tpu.memory_space<vmem>> -> memref<1x32xf32, #tpu.memory_space<vmem>>
      %17 = tpu.memref_slice %arg11[%c1_i32] : memref<8x!tpu.dma_semaphore, #tpu.memory_space<semaphore_mem>> -> memref<1x!tpu.dma_semaphore, #tpu.memory_space<semaphore_mem>>
      %18 = tpu.memref_squeeze %17 : memref<1x!tpu.dma_semaphore, #tpu.memory_space<semaphore_mem>> -> memref<!tpu.dma_semaphore, #tpu.memory_space<semaphore_mem>>
      tpu.enqueue_dma source(%15 : memref<1x32xf32, #tpu.memory_space<any>>) target(%16 : memref<1x32xf32, #tpu.memory_space<vmem>>) target_semaphore(%18 : memref<!tpu.dma_semaphore, #tpu.memory_space<semaphore_mem>>)
      %c2 = arith.constant 2 : index
      %19 = memref.load %arg1[%c2] : memref<8xi32, #tpu.memory_space<smem>>
      %c2_i32_11 = arith.constant 2 : i32
      %c0_i32_12 = arith.constant 0 : i32
      %20 = tpu.memref_slice %arg2[%19, %c0_i32_12] : memref<128x32xf32, #tpu.memory_space<any>> -> memref<1x32xf32, #tpu.memory_space<any>>
      %c2_i32_13 = arith.constant 2 : i32
      %c0_i32_14 = arith.constant 0 : i32
      %21 = tpu.memref_slice %arg10[%c2_i32_13, %c0_i32_14] : memref<8x32xf32, #tpu.memory_space<vmem>> -> memref<1x32xf32, #tpu.memory_space<vmem>>
      %22 = tpu.memref_slice %arg11[%c2_i32_11] : memref<8x!tpu.dma_semaphore, #tpu.memory_space<semaphore_mem>> -> memref<1x!tpu.dma_semaphore, #tpu.memory_space<semaphore_mem>>
      %23 = tpu.memref_squeeze %22 : memref<1x!tpu.dma_semaphore, #tpu.memory_space<semaphore_mem>> -> memref<!tpu.dma_semaphore, #tpu.memory_space<semaphore_mem>>
      tpu.enqueue_dma source(%20 : memref<1x32xf32, #tpu.memory_space<any>>) target(%21 : memref<1x32xf32, #tpu.memory_space<vmem>>) target_semaphore(%23 : memref<!tpu.dma_semaphore, #tpu.memory_space<semaphore_mem>>)
      %c3 = arith.constant 3 : index
      %24 = memref.load %arg1[%c3] : memref<8xi32, #tpu.memory_space<smem>>
      %c3_i32 = arith.constant 3 : i32
      %c0_i32_15 = arith.constant 0 : i32
      %25 = tpu.memref_slice %arg2[%24, %c0_i32_15] : memref<128x32xf32, #tpu.memory_space<any>> -> memref<1x32xf32, #tpu.memory_space<any>>
      %c3_i32_16 = arith.constant 3 : i32
      %c0_i32_17 = arith.constant 0 : i32
      %26 = tpu.memref_slice %arg10[%c3_i32_16, %c0_i32_17] : memref<8x32xf32, #tpu.memory_space<vmem>> -> memref<1x32xf32, #tpu.memory_space<vmem>>
      %27 = tpu.memref_slice %arg11[%c3_i32] : memref<8x!tpu.dma_semaphore, #tpu.memory_space<semaphore_mem>> -> memref<1x!tpu.dma_semaphore, #tpu.memory_space<semaphore_mem>>
      %28 = tpu.memref_squeeze %27 : memref<1x!tpu.dma_semaphore, #tpu.memory_space<semaphore_mem>> -> memref<!tpu.dma_semaphore, #tpu.memory_space<semaphore_mem>>
      tpu.enqueue_dma source(%25 : memref<1x32xf32, #tpu.memory_space<any>>) target(%26 : memref<1x32xf32, #tpu.memory_space<vmem>>) target_semaphore(%28 : memref<!tpu.dma_semaphore, #tpu.memory_space<semaphore_mem>>)
      %c4 = arith.constant 4 : index
      %29 = memref.load %arg1[%c4] : memref<8xi32, #tpu.memory_space<smem>>
      %c4_i32 = arith.constant 4 : i32
      %c0_i32_18 = arith.constant 0 : i32
      %30 = tpu.memref_slice %arg2[%29, %c0_i32_18] : memref<128x32xf32, #tpu.memory_space<any>> -> memref<1x32xf32, #tpu.memory_space<any>>
      %c4_i32_19 = arith.constant 4 : i32
      %c0_i32_20 = arith.constant 0 : i32
      %31 = tpu.memref_slice %arg10[%c4_i32_19, %c0_i32_20] : memref<8x32xf32, #tpu.memory_space<vmem>> -> memref<1x32xf32, #tpu.memory_space<vmem>>
      %32 = tpu.memref_slice %arg11[%c4_i32] : memref<8x!tpu.dma_semaphore, #tpu.memory_space<semaphore_mem>> -> memref<1x!tpu.dma_semaphore, #tpu.memory_space<semaphore_mem>>
      %33 = tpu.memref_squeeze %32 : memref<1x!tpu.dma_semaphore, #tpu.memory_space<semaphore_mem>> -> memref<!tpu.dma_semaphore, #tpu.memory_space<semaphore_mem>>
      tpu.enqueue_dma source(%30 : memref<1x32xf32, #tpu.memory_space<any>>) target(%31 : memref<1x32xf32, #tpu.memory_space<vmem>>) target_semaphore(%33 : memref<!tpu.dma_semaphore, #tpu.memory_space<semaphore_mem>>)
      %c5 = arith.constant 5 : index
      %34 = memref.load %arg1[%c5] : memref<8xi32, #tpu.memory_space<smem>>
      %c5_i32 = arith.constant 5 : i32
      %c0_i32_21 = arith.constant 0 : i32
      %35 = tpu.memref_slice %arg2[%34, %c0_i32_21] : memref<128x32xf32, #tpu.memory_space<any>> -> memref<1x32xf32, #tpu.memory_space<any>>
      %c5_i32_22 = arith.constant 5 : i32
      %c0_i32_23 = arith.constant 0 : i32
      %36 = tpu.memref_slice %arg10[%c5_i32_22, %c0_i32_23] : memref<8x32xf32, #tpu.memory_space<vmem>> -> memref<1x32xf32, #tpu.memory_space<vmem>>
      %37 = tpu.memref_slice %arg11[%c5_i32] : memref<8x!tpu.dma_semaphore, #tpu.memory_space<semaphore_mem>> -> memref<1x!tpu.dma_semaphore, #tpu.memory_space<semaphore_mem>>
      %38 = tpu.memref_squeeze %37 : memref<1x!tpu.dma_semaphore, #tpu.memory_space<semaphore_mem>> -> memref<!tpu.dma_semaphore, #tpu.memory_space<semaphore_mem>>
      tpu.enqueue_dma source(%35 : memref<1x32xf32, #tpu.memory_space<any>>) target(%36 : memref<1x32xf32, #tpu.memory_space<vmem>>) target_semaphore(%38 : memref<!tpu.dma_semaphore, #tpu.memory_space<semaphore_mem>>)
      %c6 = arith.constant 6 : index
      %39 = memref.load %arg1[%c6] : memref<8xi32, #tpu.memory_space<smem>>
      %c6_i32 = arith.constant 6 : i32
      %c0_i32_24 = arith.constant 0 : i32
      %40 = tpu.memref_slice %arg2[%39, %c0_i32_24] : memref<128x32xf32, #tpu.memory_space<any>> -> memref<1x32xf32, #tpu.memory_space<any>>
      %c6_i32_25 = arith.constant 6 : i32
      %c0_i32_26 = arith.constant 0 : i32
      %41 = tpu.memref_slice %arg10[%c6_i32_25, %c0_i32_26] : memref<8x32xf32, #tpu.memory_space<vmem>> -> memref<1x32xf32, #tpu.memory_space<vmem>>
      %42 = tpu.memref_slice %arg11[%c6_i32] : memref<8x!tpu.dma_semaphore, #tpu.memory_space<semaphore_mem>> -> memref<1x!tpu.dma_semaphore, #tpu.memory_space<semaphore_mem>>
      %43 = tpu.memref_squeeze %42 : memref<1x!tpu.dma_semaphore, #tpu.memory_space<semaphore_mem>> -> memref<!tpu.dma_semaphore, #tpu.memory_space<semaphore_mem>>
      tpu.enqueue_dma source(%40 : memref<1x32xf32, #tpu.memory_space<any>>) target(%41 : memref<1x32xf32, #tpu.memory_space<vmem>>) target_semaphore(%43 : memref<!tpu.dma_semaphore, #tpu.memory_space<semaphore_mem>>)
      %c7 = arith.constant 7 : index
      %44 = memref.load %arg1[%c7] : memref<8xi32, #tpu.memory_space<smem>>
      %c7_i32 = arith.constant 7 : i32
      %c0_i32_27 = arith.constant 0 : i32
      %45 = tpu.memref_slice %arg2[%44, %c0_i32_27] : memref<128x32xf32, #tpu.memory_space<any>> -> memref<1x32xf32, #tpu.memory_space<any>>
      %c7_i32_28 = arith.constant 7 : i32
      %c0_i32_29 = arith.constant 0 : i32
      %46 = tpu.memref_slice %arg10[%c7_i32_28, %c0_i32_29] : memref<8x32xf32, #tpu.memory_space<vmem>> -> memref<1x32xf32, #tpu.memory_space<vmem>>
      %47 = tpu.memref_slice %arg11[%c7_i32] : memref<8x!tpu.dma_semaphore, #tpu.memory_space<semaphore_mem>> -> memref<1x!tpu.dma_semaphore, #tpu.memory_space<semaphore_mem>>
      %48 = tpu.memref_squeeze %47 : memref<1x!tpu.dma_semaphore, #tpu.memory_space<semaphore_mem>> -> memref<!tpu.dma_semaphore, #tpu.memory_space<semaphore_mem>>
      tpu.enqueue_dma source(%45 : memref<1x32xf32, #tpu.memory_space<any>>) target(%46 : memref<1x32xf32, #tpu.memory_space<vmem>>) target_semaphore(%48 : memref<!tpu.dma_semaphore, #tpu.memory_space<semaphore_mem>>)
      %c0_i32_30 = arith.constant 0 : i32
      %c0_i32_31 = arith.constant 0 : i32
      %49 = tpu.memref_slice %arg2[%9, %c0_i32_31] : memref<128x32xf32, #tpu.memory_space<any>> -> memref<1x32xf32, #tpu.memory_space<any>>
      %c0_i32_32 = arith.constant 0 : i32
      %c0_i32_33 = arith.constant 0 : i32
      %50 = tpu.memref_slice %arg10[%c0_i32_32, %c0_i32_33] : memref<8x32xf32, #tpu.memory_space<vmem>> -> memref<1x32xf32, #tpu.memory_space<vmem>>
      %51 = tpu.memref_slice %arg11[%c0_i32_30] : memref<8x!tpu.dma_semaphore, #tpu.memory_space<semaphore_mem>> -> memref<1x!tpu.dma_semaphore, #tpu.memory_space<semaphore_mem>>
      %52 = tpu.memref_squeeze %51 : memref<1x!tpu.dma_semaphore, #tpu.memory_space<semaphore_mem>> -> memref<!tpu.dma_semaphore, #tpu.memory_space<semaphore_mem>>
      tpu.wait_dma2 semaphore(%52 : memref<!tpu.dma_semaphore, #tpu.memory_space<semaphore_mem>>) src(%49 : memref<1x32xf32, #tpu.memory_space<any>>) dst(%50 : memref<1x32xf32, #tpu.memory_space<vmem>>)
      %c1_i32_34 = arith.constant 1 : i32
      %c0_i32_35 = arith.constant 0 : i32
      %53 = tpu.memref_slice %arg2[%14, %c0_i32_35] : memref<128x32xf32, #tpu.memory_space<any>> -> memref<1x32xf32, #tpu.memory_space<any>>
      %c1_i32_36 = arith.constant 1 : i32
      %c0_i32_37 = arith.constant 0 : i32
      %54 = tpu.memref_slice %arg10[%c1_i32_36, %c0_i32_37] : memref<8x32xf32, #tpu.memory_space<vmem>> -> memref<1x32xf32, #tpu.memory_space<vmem>>
      %55 = tpu.memref_slice %arg11[%c1_i32_34] : memref<8x!tpu.dma_semaphore, #tpu.memory_space<semaphore_mem>> -> memref<1x!tpu.dma_semaphore, #tpu.memory_space<semaphore_mem>>
      %56 = tpu.memref_squeeze %55 : memref<1x!tpu.dma_semaphore, #tpu.memory_space<semaphore_mem>> -> memref<!tpu.dma_semaphore, #tpu.memory_space<semaphore_mem>>
      tpu.wait_dma2 semaphore(%56 : memref<!tpu.dma_semaphore, #tpu.memory_space<semaphore_mem>>) src(%53 : memref<1x32xf32, #tpu.memory_space<any>>) dst(%54 : memref<1x32xf32, #tpu.memory_space<vmem>>)
      %c2_i32_38 = arith.constant 2 : i32
      %c0_i32_39 = arith.constant 0 : i32
      %57 = tpu.memref_slice %arg2[%19, %c0_i32_39] : memref<128x32xf32, #tpu.memory_space<any>> -> memref<1x32xf32, #tpu.memory_space<any>>
      %c2_i32_40 = arith.constant 2 : i32
      %c0_i32_41 = arith.constant 0 : i32
      %58 = tpu.memref_slice %arg10[%c2_i32_40, %c0_i32_41] : memref<8x32xf32, #tpu.memory_space<vmem>> -> memref<1x32xf32, #tpu.memory_space<vmem>>
      %59 = tpu.memref_slice %arg11[%c2_i32_38] : memref<8x!tpu.dma_semaphore, #tpu.memory_space<semaphore_mem>> -> memref<1x!tpu.dma_semaphore, #tpu.memory_space<semaphore_mem>>
      %60 = tpu.memref_squeeze %59 : memref<1x!tpu.dma_semaphore, #tpu.memory_space<semaphore_mem>> -> memref<!tpu.dma_semaphore, #tpu.memory_space<semaphore_mem>>
      tpu.wait_dma2 semaphore(%60 : memref<!tpu.dma_semaphore, #tpu.memory_space<semaphore_mem>>) src(%57 : memref<1x32xf32, #tpu.memory_space<any>>) dst(%58 : memref<1x32xf32, #tpu.memory_space<vmem>>)
      %c3_i32_42 = arith.constant 3 : i32
      %c0_i32_43 = arith.constant 0 : i32
      %61 = tpu.memref_slice %arg2[%24, %c0_i32_43] : memref<128x32xf32, #tpu.memory_space<any>> -> memref<1x32xf32, #tpu.memory_space<any>>
      %c3_i32_44 = arith.constant 3 : i32
      %c0_i32_45 = arith.constant 0 : i32
      %62 = tpu.memref_slice %arg10[%c3_i32_44, %c0_i32_45] : memref<8x32xf32, #tpu.memory_space<vmem>> -> memref<1x32xf32, #tpu.memory_space<vmem>>
      %63 = tpu.memref_slice %arg11[%c3_i32_42] : memref<8x!tpu.dma_semaphore, #tpu.memory_space<semaphore_mem>> -> memref<1x!tpu.dma_semaphore, #tpu.memory_space<semaphore_mem>>
      %64 = tpu.memref_squeeze %63 : memref<1x!tpu.dma_semaphore, #tpu.memory_space<semaphore_mem>> -> memref<!tpu.dma_semaphore, #tpu.memory_space<semaphore_mem>>
      tpu.wait_dma2 semaphore(%64 : memref<!tpu.dma_semaphore, #tpu.memory_space<semaphore_mem>>) src(%61 : memref<1x32xf32, #tpu.memory_space<any>>) dst(%62 : memref<1x32xf32, #tpu.memory_space<vmem>>)
      %c4_i32_46 = arith.constant 4 : i32
      %c0_i32_47 = arith.constant 0 : i32
      %65 = tpu.memref_slice %arg2[%29, %c0_i32_47] : memref<128x32xf32, #tpu.memory_space<any>> -> memref<1x32xf32, #tpu.memory_space<any>>
      %c4_i32_48 = arith.constant 4 : i32
      %c0_i32_49 = arith.constant 0 : i32
      %66 = tpu.memref_slice %arg10[%c4_i32_48, %c0_i32_49] : memref<8x32xf32, #tpu.memory_space<vmem>> -> memref<1x32xf32, #tpu.memory_space<vmem>>
      %67 = tpu.memref_slice %arg11[%c4_i32_46] : memref<8x!tpu.dma_semaphore, #tpu.memory_space<semaphore_mem>> -> memref<1x!tpu.dma_semaphore, #tpu.memory_space<semaphore_mem>>
      %68 = tpu.memref_squeeze %67 : memref<1x!tpu.dma_semaphore, #tpu.memory_space<semaphore_mem>> -> memref<!tpu.dma_semaphore, #tpu.memory_space<semaphore_mem>>
      tpu.wait_dma2 semaphore(%68 : memref<!tpu.dma_semaphore, #tpu.memory_space<semaphore_mem>>) src(%65 : memref<1x32xf32, #tpu.memory_space<any>>) dst(%66 : memref<1x32xf32, #tpu.memory_space<vmem>>)
      %c5_i32_50 = arith.constant 5 : i32
      %c0_i32_51 = arith.constant 0 : i32
      %69 = tpu.memref_slice %arg2[%34, %c0_i32_51] : memref<128x32xf32, #tpu.memory_space<any>> -> memref<1x32xf32, #tpu.memory_space<any>>
      %c5_i32_52 = arith.constant 5 : i32
      %c0_i32_53 = arith.constant 0 : i32
      %70 = tpu.memref_slice %arg10[%c5_i32_52, %c0_i32_53] : memref<8x32xf32, #tpu.memory_space<vmem>> -> memref<1x32xf32, #tpu.memory_space<vmem>>
      %71 = tpu.memref_slice %arg11[%c5_i32_50] : memref<8x!tpu.dma_semaphore, #tpu.memory_space<semaphore_mem>> -> memref<1x!tpu.dma_semaphore, #tpu.memory_space<semaphore_mem>>
      %72 = tpu.memref_squeeze %71 : memref<1x!tpu.dma_semaphore, #tpu.memory_space<semaphore_mem>> -> memref<!tpu.dma_semaphore, #tpu.memory_space<semaphore_mem>>
      tpu.wait_dma2 semaphore(%72 : memref<!tpu.dma_semaphore, #tpu.memory_space<semaphore_mem>>) src(%69 : memref<1x32xf32, #tpu.memory_space<any>>) dst(%70 : memref<1x32xf32, #tpu.memory_space<vmem>>)
      %c6_i32_54 = arith.constant 6 : i32
      %c0_i32_55 = arith.constant 0 : i32
      %73 = tpu.memref_slice %arg2[%39, %c0_i32_55] : memref<128x32xf32, #tpu.memory_space<any>> -> memref<1x32xf32, #tpu.memory_space<any>>
      %c6_i32_56 = arith.constant 6 : i32
      %c0_i32_57 = arith.constant 0 : i32
      %74 = tpu.memref_slice %arg10[%c6_i32_56, %c0_i32_57] : memref<8x32xf32, #tpu.memory_space<vmem>> -> memref<1x32xf32, #tpu.memory_space<vmem>>
      %75 = tpu.memref_slice %arg11[%c6_i32_54] : memref<8x!tpu.dma_semaphore, #tpu.memory_space<semaphore_mem>> -> memref<1x!tpu.dma_semaphore, #tpu.memory_space<semaphore_mem>>
      %76 = tpu.memref_squeeze %75 : memref<1x!tpu.dma_semaphore, #tpu.memory_space<semaphore_mem>> -> memref<!tpu.dma_semaphore, #tpu.memory_space<semaphore_mem>>
      tpu.wait_dma2 semaphore(%76 : memref<!tpu.dma_semaphore, #tpu.memory_space<semaphore_mem>>) src(%73 : memref<1x32xf32, #tpu.memory_space<any>>) dst(%74 : memref<1x32xf32, #tpu.memory_space<vmem>>)
      %c7_i32_58 = arith.constant 7 : i32
      %c0_i32_59 = arith.constant 0 : i32
      %77 = tpu.memref_slice %arg2[%44, %c0_i32_59] : memref<128x32xf32, #tpu.memory_space<any>> -> memref<1x32xf32, #tpu.memory_space<any>>
      %c7_i32_60 = arith.constant 7 : i32
      %c0_i32_61 = arith.constant 0 : i32
      %78 = tpu.memref_slice %arg10[%c7_i32_60, %c0_i32_61] : memref<8x32xf32, #tpu.memory_space<vmem>> -> memref<1x32xf32, #tpu.memory_space<vmem>>
      %79 = tpu.memref_slice %arg11[%c7_i32_58] : memref<8x!tpu.dma_semaphore, #tpu.memory_space<semaphore_mem>> -> memref<1x!tpu.dma_semaphore, #tpu.memory_space<semaphore_mem>>
      %80 = tpu.memref_squeeze %79 : memref<1x!tpu.dma_semaphore, #tpu.memory_space<semaphore_mem>> -> memref<!tpu.dma_semaphore, #tpu.memory_space<semaphore_mem>>
      tpu.wait_dma2 semaphore(%80 : memref<!tpu.dma_semaphore, #tpu.memory_space<semaphore_mem>>) src(%77 : memref<1x32xf32, #tpu.memory_space<any>>) dst(%78 : memref<1x32xf32, #tpu.memory_space<vmem>>)
    } else {
    }
    %c2_i32 = arith.constant 2 : i32
    %3 = arith.cmpi slt, %arg0, %c2_i32 : i32
    %4 = arith.extui %3 : i1 to i32
    %c0_i32_1 = arith.constant 0 : i32
    %5 = arith.cmpi ne, %4, %c0_i32_1 : i32
    scf.if %5 {
      %c0 = arith.constant 0 : index
      %c0_4 = arith.constant 0 : index
      %c0_5 = arith.constant 0 : index
      %9 = vector.load %arg3[%c0, %c0_4, %c0_5] : memref<1x64x128xbf16, #tpu.memory_space<vmem>>, vector<1x32x128xbf16>
      %10 = vector.shape_cast %9 : vector<1x32x128xbf16> to vector<32x128xbf16>
      %c0_6 = arith.constant 0 : index
      %c32 = arith.constant 32 : index
      %c0_7 = arith.constant 0 : index
      %11 = vector.load %arg3[%c0_6, %c32, %c0_7] : memref<1x64x128xbf16, #tpu.memory_space<vmem>>, vector<1x32x128xbf16>
      %12 = vector.shape_cast %11 : vector<1x32x128xbf16> to vector<32x128xbf16>
      %c0_8 = arith.constant 0 : index
      %c0_9 = arith.constant 0 : index
      %c0_10 = arith.constant 0 : index
      %13 = vector.load %arg4[%c0_8, %c0_9, %c0_10] : memref<1x1x128xbf16, #tpu.memory_space<vmem>>, vector<1x1x128xbf16>
      %14 = vector.shape_cast %13 : vector<1x1x128xbf16> to vector<1x128xbf16>
      %15 = arith.extf %14 : vector<1x128xbf16> to vector<1x128xf32>
      %c0_11 = arith.constant 0 : index
      %c0_12 = arith.constant 0 : index
      %16 = vector.load %arg10[%c0_11, %c0_12] : memref<8x32xf32, #tpu.memory_space<vmem>>, vector<8x32xf32>
      %17 = arith.truncf %16 : vector<8x32xf32> to vector<8x32xbf16>
      %18 = arith.index_cast %arg0 : i32 to index
      %c0_13 = arith.constant 0 : index
      %c0_14 = arith.constant 0 : index
      %19 = vector.load %arg7[%18, %c0_13, %c0_14] : memref<4x8x32xf32, #tpu.memory_space<vmem>>, vector<1x8x32xf32>
      %20 = vector.shape_cast %19 : vector<1x8x32xf32> to vector<8x32xf32>
      %c2_i32_15 = arith.constant 2 : i32
      %21 = arith.addi %c2_i32_15, %arg0 : i32
      %22 = arith.index_cast %21 : i32 to index
      %c0_16 = arith.constant 0 : index
      %c0_17 = arith.constant 0 : index
      %23 = vector.load %arg7[%22, %c0_16, %c0_17] : memref<4x8x32xf32, #tpu.memory_space<vmem>>, vector<1x8x32xf32>
      %24 = vector.shape_cast %23 : vector<1x8x32xf32> to vector<8x32xf32>
      %cst = arith.constant dense<0.000000e+00> : vector<8x128xf32>
      %25 = tpu.matmul %17, %10, %cst {dimension_numbers = #tpu.dot_dimension_numbers<[1], [0], [0], [1], [0, 0, 1, 1], [], []>} : vector<8x32xbf16>, vector<32x128xbf16>, vector<8x128xf32> -> vector<8x128xf32>
      %26 = arith.truncf %20 : vector<8x32xf32> to vector<8x32xbf16>
      %cst_18 = arith.constant dense<0.000000e+00> : vector<8x128xf32>
      %27 = tpu.matmul %26, %12, %cst_18 {dimension_numbers = #tpu.dot_dimension_numbers<[1], [0], [0], [1], [0, 0, 1, 1], [], []>} : vector<8x32xbf16>, vector<32x128xbf16>, vector<8x128xf32> -> vector<8x128xf32>
      %28 = arith.addf %25, %27 : vector<8x128xf32>
      %29 = vector.broadcast %15 : vector<1x128xf32> to vector<8x128xf32>
      %30 = arith.addf %28, %29 : vector<8x128xf32>
      %31 = vector.extract_strided_slice %30 {offsets = [0, 0], sizes = [8, 96], strides = [1, 1]} : vector<8x128xf32> to vector<8x96xf32>
      %32 = arith.negf %31 : vector<8x96xf32>
      %33 = math.exp %32 : vector<8x96xf32>
      %cst_19 = arith.constant 1.000000e+00 : f32
      %34 = vector.broadcast %cst_19 : f32 to vector<8x96xf32>
      %35 = arith.addf %34, %33 : vector<8x96xf32>
      %36 = arith.divf %34, %35 : vector<8x96xf32>
      %37 = vector.extract_strided_slice %30 {offsets = [0, 96], sizes = [8, 32], strides = [1, 1]} : vector<8x128xf32> to vector<8x32xf32>
      %38 = math.tanh %37 : vector<8x32xf32>
      %39 = vector.extract_strided_slice %36 {offsets = [0, 0], sizes = [8, 32], strides = [1, 1]} : vector<8x96xf32> to vector<8x32xf32>
      %40 = vector.extract_strided_slice %36 {offsets = [0, 32], sizes = [8, 32], strides = [1, 1]} : vector<8x96xf32> to vector<8x32xf32>
      %41 = vector.extract_strided_slice %36 {offsets = [0, 64], sizes = [8, 32], strides = [1, 1]} : vector<8x96xf32> to vector<8x32xf32>
      %42 = arith.mulf %40, %24 : vector<8x32xf32>
      %43 = arith.mulf %39, %38 : vector<8x32xf32>
      %44 = arith.addf %42, %43 : vector<8x32xf32>
      %45 = math.tanh %44 : vector<8x32xf32>
      %46 = arith.mulf %41, %45 : vector<8x32xf32>
      %47 = arith.index_cast %arg0 : i32 to index
      %c0_20 = arith.constant 0 : index
      %c0_21 = arith.constant 0 : index
      %48 = vector.load %arg9[%47, %c0_20, %c0_21] : memref<4x8x32xf32, #tpu.memory_space<vmem>>, vector<1x8x32xf32>
      %49 = vector.shape_cast %48 : vector<1x8x32xf32> to vector<8x32xf32>
      %50 = vector.shape_cast %46 : vector<8x32xf32> to vector<1x8x32xf32>
      tpu.vector_store %arg9[%47, %c0_20, %c0_21], %50 {strides = array<i32>} : memref<4x8x32xf32, #tpu.memory_space<vmem>>, vector<1x8x32xf32>,
      %c2_i32_22 = arith.constant 2 : i32
      %51 = arith.addi %c2_i32_22, %arg0 : i32
      %52 = arith.index_cast %51 : i32 to index
      %c0_23 = arith.constant 0 : index
      %c0_24 = arith.constant 0 : index
      %53 = vector.load %arg9[%52, %c0_23, %c0_24] : memref<4x8x32xf32, #tpu.memory_space<vmem>>, vector<1x8x32xf32>
      %54 = vector.shape_cast %53 : vector<1x8x32xf32> to vector<8x32xf32>
      %55 = vector.shape_cast %44 : vector<8x32xf32> to vector<1x8x32xf32>
      tpu.vector_store %arg9[%52, %c0_23, %c0_24], %55 {strides = array<i32>} : memref<4x8x32xf32, #tpu.memory_space<vmem>>, vector<1x8x32xf32>,
      %c0_25 = arith.constant 0 : index
      %c0_26 = arith.constant 0 : index
      %56 = vector.load %arg10[%c0_25, %c0_26] : memref<8x32xf32, #tpu.memory_space<vmem>>, vector<8x32xf32>
      tpu.vector_store %arg10[%c0_25, %c0_26], %46 {strides = array<i32>} : memref<8x32xf32, #tpu.memory_space<vmem>>, vector<8x32xf32>,
    } else {
    }
    %c2_i32_2 = arith.constant 2 : i32
    %6 = arith.cmpi sge, %arg0, %c2_i32_2 : i32
    %7 = arith.extui %6 : i1 to i32
    %c0_i32_3 = arith.constant 0 : i32
    %8 = arith.cmpi ne, %7, %c0_i32_3 : i32
    scf.if %8 {
      %c0 = arith.constant 0 : index
      %c0_4 = arith.constant 0 : index
      %9 = vector.load %arg10[%c0, %c0_4] : memref<8x32xf32, #tpu.memory_space<vmem>>, vector<8x32xf32>
      %10 = arith.truncf %9 : vector<8x32xf32> to vector<8x32xbf16>
      %c0_5 = arith.constant 0 : index
      %c0_6 = arith.constant 0 : index
      %11 = vector.load %arg5[%c0_5, %c0_6] : memref<32x128xbf16, #tpu.memory_space<vmem>>, vector<32x128xbf16>
      %cst = arith.constant dense<0.000000e+00> : vector<8x128xf32>
      %12 = tpu.matmul %10, %11, %cst {dimension_numbers = #tpu.dot_dimension_numbers<[1], [0], [0], [1], [0, 0, 1, 1], [], []>} : vector<8x32xbf16>, vector<32x128xbf16>, vector<8x128xf32> -> vector<8x128xf32>
      %c0_7 = arith.constant 0 : index
      %c0_8 = arith.constant 0 : index
      %13 = vector.load %arg6[%c0_7, %c0_8] : memref<1x128xbf16, #tpu.memory_space<vmem>>, vector<1x128xbf16>
      %14 = arith.extf %13 : vector<1x128xbf16> to vector<1x128xf32>
      %15 = vector.broadcast %14 : vector<1x128xf32> to vector<8x128xf32>
      %16 = arith.addf %12, %15 : vector<8x128xf32>
      %c0_9 = arith.constant 0 : index
      %c0_10 = arith.constant 0 : index
      %17 = vector.load %arg8[%c0_9, %c0_10] : memref<8x128xf32, #tpu.memory_space<vmem>>, vector<8x128xf32>
      tpu.vector_store %arg8[%c0_9, %c0_10], %16 {strides = array<i32>} : memref<8x128xf32, #tpu.memory_space<vmem>>, vector<8x128xf32>,
    } else {
    }
    return
  }
  func.func @transform_0(%arg0: i32) -> i32 {
    %c0_i32 = arith.constant 0 : i32
    %c0_i32_0 = arith.constant 0 : i32
    return %c0_i32 : i32
  }
  func.func @transform_2(%arg0: i32) -> (i32, i32, i32) {
    %c1_i32 = arith.constant 1 : i32
    %0 = arith.minsi %arg0, %c1_i32 : i32
    %c0_i32 = arith.constant 0 : i32
    %c0_i32_0 = arith.constant 0 : i32
    %c0_i32_1 = arith.constant 0 : i32
    return %0, %c0_i32, %c0_i32_0 : i32, i32, i32
  }
  func.func @transform_3(%arg0: i32) -> (i32, i32, i32) {
    %c1_i32 = arith.constant 1 : i32
    %0 = arith.minsi %arg0, %c1_i32 : i32
    %c0_i32 = arith.constant 0 : i32
    %c0_i32_0 = arith.constant 0 : i32
    %c0_i32_1 = arith.constant 0 : i32
    return %0, %c0_i32, %c0_i32_0 : i32, i32, i32
  }
  func.func @transform_4(%arg0: i32) -> (i32, i32) {
    %c2_i32 = arith.constant 2 : i32
    %0 = arith.subi %arg0, %c2_i32 : i32
    %c0_i32 = arith.constant 0 : i32
    %1 = arith.maxsi %0, %c0_i32 : i32
    %c0_i32_0 = arith.constant 0 : i32
    %c0_i32_1 = arith.constant 0 : i32
    return %c0_i32_0, %1 : i32, i32
  }
  func.func @transform_5(%arg0: i32) -> (i32, i32) {
    %c2_i32 = arith.constant 2 : i32
    %0 = arith.subi %arg0, %c2_i32 : i32
    %c0_i32 = arith.constant 0 : i32
    %1 = arith.maxsi %0, %c0_i32 : i32
    %c0_i32_0 = arith.constant 0 : i32
    %c0_i32_1 = arith.constant 0 : i32
    return %c0_i32_0, %1 : i32, i32
  }
  func.func @transform_6(%arg0: i32) -> (i32, i32, i32) {
    %c0_i32 = arith.constant 0 : i32
    %c0_i32_0 = arith.constant 0 : i32
    %c0_i32_1 = arith.constant 0 : i32
    %c0_i32_2 = arith.constant 0 : i32
    return %c0_i32, %c0_i32_0, %c0_i32_1 : i32, i32, i32
  }
  func.func @transform_7(%arg0: i32) -> (i32, i32) {
    %c2_i32 = arith.constant 2 : i32
    %0 = arith.subi %arg0, %c2_i32 : i32
    %c0_i32 = arith.constant 0 : i32
    %1 = arith.maxsi %0, %c0_i32 : i32
    %c0_i32_0 = arith.constant 0 : i32
    %c0_i32_1 = arith.constant 0 : i32
    return %c0_i32_0, %1 : i32, i32
  }
  func.func @transform_8(%arg0: i32) -> (i32, i32, i32) {
    %c0_i32 = arith.constant 0 : i32
    %c0_i32_0 = arith.constant 0 : i32
    %c0_i32_1 = arith.constant 0 : i32
    %c0_i32_2 = arith.constant 0 : i32
    return %c0_i32, %c0_i32_0, %c0_i32_1 : i32, i32, i32
  }
}

</mosaic_0001>

<bundles_post_ra>
// kernel: decoder_step.1
= control target key start
LH: loop header
LB: loop body
LE: loop exit
PB: predicated region body
PF: predicated region fallthrough
CT: control target
= control target key end

     0   :  { %s1883_s0 = inlined_call_operand.vmem [shape: s32[8], index: 0, kind: input, shape index: {}]   ;;  %s1884_s1 = inlined_call_operand.vmem [shape: f32[128,32], index: 1, kind: input, shape index: {}]   ;;  %s1885_s2 = inlined_call_operand.vmem [shape: bf16[2,64,128], index: 2, kind: input, shape index: {}]   ;;  %s1886_s3 = inlined_call_operand.vmem [shape: bf16[2,1,128], index: 3, kind: input, shape index: {}]   ;;  %s1887_s4 = inlined_call_operand.vmem [shape: bf16[32,128], index: 4, kind: input, shape index: {}]   ;;  %s1888_s5 = inlined_call_operand.vmem [shape: bf16[1,128], index: 5, kind: input, shape index: {}]   ;;  %s1889_s6 = inlined_call_operand.vmem [shape: f32[4,8,32], index: 6, kind: input, shape index: {}, may-alias: {6,8}]   ;;  %s1890_s7 = inlined_call_operand.hbm [shape: f32[8,128], index: 7, kind: output, shape index: {0}]   ;;  %s1891_s8 = inlined_call_operand.vmem [shape: f32[4,8,32], index: 8, kind: output, shape index: {1}, may-alias: {6,8}]  }
   0x1   :  { %1893 = sst [smem:[#allocation27_spill]] %s1883_s0 }
   0x2   :  { %14 = vsyncpa [#allocation6], 0 }
   0x3   :  { %15 = vsyncpa [#allocation5], 0 }
   0x4   :  { %17 = vsyncpa [#allocation5 + $0x1], 0  ;;  %s1686_s27 = smov 0   ;;  %s1688_s28 = smov 0  }
   0x5   :  { %s1690_s29 = smov 0   ;;  %s1692_s30 = smov 0  }
   0x6 LB: > { %s1707_s9 = sadd.s32 4294967295, %s1630_s30   ;;  %s1356_s10 = sadd.s32 4294967294, %s1630_s30   ;;  %s1630_s30 = sphi %s1692_s30, %s1908_s30   ;;  %s1626_s29 = sphi %s1690_s29, %s1907_s29   ;;  %s1622_s28 = sphi %s1688_s28, %s1906_s28   ;;  %s1618_s27 = sphi %s1686_s27, %s1905_s27  }
   0x7   : > { %s1711_s11 = sadd.s32 1, %s1630_s30   ;;  %p194_p0 = scmp.gt.s32.totalorder %s1356_s10, 0 }
   0x8   : > { %s1362_s12 = sadd.s32 4294967294, %s1711_s11  ;;  %s202_s13 = sadd.s32 1, %s1626_s29 }
   0x9   : > { %s195_s14 = scalar_select %p194_p0, %s1356_s10, 0 }
   0xa   : > { %p197_p1 = scmp.gt.s32.totalorder %s1362_s12, 0  ;;  %p212_p2 = scmp.ne.s32.totalorder %s1626_s29, %s1622_s28 }
   0xb   : > { %p213_p3 = scmp.eq.s32.totalorder %s1707_s9, 2  ;;  %p218_p4 = scmp.ne.s32.totalorder %s1622_s28, %s1618_s27 }
   0xc   : > { %s1910_s12 = smov (!%p197_p1, %s1362_s12), 0  ;;  %p219_p6 = scmp.eq.s32.totalorder %s1356_s10, 2 }
   0xd   : > { %p1720_p5 = por %p213_p3, %p212_p2  ;;  %s199_s16 = ssub.s32 %s195_s14, %s1910_s12 }
   0xe   : > { %p1363_p7 = scmp.ge.s32.totalorder %s1630_s30, 1  ;;  %p200_p8 = scmp.eq.s32.totalorder %s199_s16, 0 }
   0xf   : > { %p1725_p9 = por %p219_p6, %p218_p4  ;;  %p247_p10 = scmp.lt.s32.totalorder %s1630_s30, 4 }
  0x10   : > { %s1732_s18 = scalar_select %p200_p8, %s1626_s29, %s202_s13  }
  0x11   : > { %p1734_p12 = pnand %p1363_p7, %p247_p10  ;;  %p1476_p13 = scmp.eq.s32.totalorder %s1707_s9, 0 }
  0x12   : > { %1896 = sst [smem:[#allocation26_spill]] %s1732_s18  ;;  %s1898_s0 = sld [smem:[#allocation27_spill]] }
  0x13   : > { %p1468_p0 = pneg %p1734_p12 }
  0x15   : > { %p1469_p1 = pnand %p1476_p13, %p1468_p0 }
  0x17   : > { %p1535_p3 = pneg %p1469_p1 }
  0x18   : > { %s260_s22 = sshll.u32 %s1898_s0, 4  ;;  %s261_s22 = int_to_ptr.vmem [resolvable:$true] %s260_s22 }
  0x19   : > { %s1533_s23 = scalar_lea.vmem %s261_s22, 16  ;;  %p1541_p7 = scmp.lt.s32.totalorder %s261_s22, %s261_s22 }
  0x1a   : > { %p1534_p2 = scmp.ne.s32.totalorder %s261_s22, %s1533_s23  ;;  %p1542_p8 = scmp.lt.s32.totalorder %s1533_s23, %s1533_s23 }
  0x1c   : > { %p1536_p4 = pnand %p1535_p3, %p1534_p2  ;;  %p1543_p10 = por %p1542_p8, %p1541_p7 }
  0x1e   : > { %p1537_p6 = pneg %p1536_p4 }
  0x20   : > { %p1544_p11 = pnand %p1543_p10, %p1537_p6 }
  0x22   : > { %1547 = shalt.err (!%p1544_p11)
}
  0x23   : > { %s1632_s24 = smov [#allocation4]   ;;  %323 = sbr.rel (%p1734_p12) target bundleno = 1105 (0x451), region = 44 }
  0x24   : > { %1471 = dma.vmem_to_smem (!%p1469_p1), %s261_s22, 16, %s1632_s24, [#allocation6]  }
  0x2a   : > { %1593 = dma.done.wait (%p1476_p13), [#allocation6], 16  }
  0x2b   : > { %1595 = vsyncadd (%p1476_p13), [#allocation6], 4294967280 }
  0x2c   : > { %329 = sfence }
  0x2d   : > { %s1892_s25 = sand.u32 1, %s1622_s28   ;;  %p376_p0 = scmp.lt.s32.totalorder %s1707_s9, 1 }
  0x2e   : > { %s1756_s26 = sshll.u32 %s1892_s25, 3  ;;  %p1899_p11 = scmp.ne.s32.totalorder %s1707_s9, 0 }
  0x2f   : > { %s377_s10 = scalar_select %p376_p0, %s1707_s9, 1 }
  0x30   : > { %418 = sbr.rel (%p1899_p11) target bundleno = 137 (0x89), region = 52  ;;  %s419_s23 = sld [smem:[#allocation4]] (!%p1899_p11) }
  0x31   : > { %s1912_s10 = smov (!%p376_p0, %s377_s10), 1 }
  0x32   : > { %s1428_s12 = sshll.u32 %s1912_s10, 5 }
  0x33   : > { %s1769_s21 = scalar_lea.vmem %s1885_s2, %s1428_s12 }
  0x36   : > { %s420_s0 = scalar_lea.vmem (!%p1899_p11), %s1884_s1, %s419_s23 }
  0x37   : > { %v438_v0 = vld [vmem:[%s420_s0] sm:$0x1] }
  0x38   : > { %439 = vst [vmem:[#allocation2] sm:$0x1] %v438_v0 }
  0x39   : > { %464 = vsyncadd [#allocation3], 16  ;;  %s1391_s18 = sld [smem:[#allocation4 + $0x1]] }
  0x3f   : > { %s466_s16 = scalar_lea.vmem %s1884_s1, %s1391_s18 }
  0x40   : > { %v486_v1 = vld [vmem:[%s466_s16] sm:$0x1] }
  0x41   : > { %487 = vst [vmem:[#allocation2 + $0x1] sm:$0x1] %v486_v1 }
  0x42   : > { %512 = vsyncadd [#allocation3 + $0x1], 16  ;;  %s1392_s12 = sld [smem:[#allocation4 + $0x2]] }
  0x48   : > { %s514_s22 = scalar_lea.vmem %s1884_s1, %s1392_s12 }
  0x49   : > { %v534_v2 = vld [vmem:[%s514_s22] sm:$0x1] }
  0x4a   : > { %535 = vst [vmem:[#allocation2 + $0x2] sm:$0x1] %v534_v2 }
  0x4b   : > { %560 = vsyncadd [#allocation3 + $0x2], 16  ;;  %s1393_s25 = sld [smem:[#allocation4 + $0x3]] }
  0x51   : > { %s562_s24 = scalar_lea.vmem %s1884_s1, %s1393_s25 }
  0x52   : > { %v582_v3 = vld [vmem:[%s562_s24] sm:$0x1] }
  0x53   : > { %583 = vst [vmem:[#allocation2 + $0x3] sm:$0x1] %v582_v3 }
  0x54   : > { %608 = vsyncadd [#allocation3 + $0x3], 16  ;;  %s1394_s18 = sld [smem:[#allocation4 + $0x4]] }
  0x5a   : > { %s610_s14 = scalar_lea.vmem %s1884_s1, %s1394_s18 }
  0x5b   : > { %v630_v4 = vld [vmem:[%s610_s14] sm:$0x1] }
  0x5c   : > { %631 = vst [vmem:[#allocation2 + $0x4] sm:$0x1] %v630_v4 }
  0x5d   : > { %656 = vsyncadd [#allocation3 + $0x4], 16  ;;  %s1395_s12 = sld [smem:[#allocation4 + $0x5]] }
  0x63   : > { %s658_s20 = scalar_lea.vmem %s1884_s1, %s1395_s12 }
  0x64   : > { %v678_v5 = vld [vmem:[%s658_s20] sm:$0x1] }
  0x65   : > { %679 = vst [vmem:[#allocation2 + $0x5] sm:$0x1] %v678_v5 }
  0x66   : > { %704 = vsyncadd [#allocation3 + $0x5], 16  ;;  %s1396_s25 = sld [smem:[#allocation4 + $0x6]] }
  0x6c   : > { %s706_s24 = scalar_lea.vmem %s1884_s1, %s1396_s25 }
  0x6d   : > { %v726_v6 = vld [vmem:[%s706_s24] sm:$0x1] }
  0x6e   : > { %727 = vst [vmem:[#allocation2 + $0x6] sm:$0x1] %v726_v6 }
  0x6f   : > { %752 = vsyncadd [#allocation3 + $0x6], 16  ;;  %s1397_s18 = sld [smem:[#allocation4 + $0x7]] }
  0x75   : > { %s754_s14 = scalar_lea.vmem %s1884_s1, %s1397_s18 }
  0x76   : > { %v774_v7 = vld [vmem:[%s754_s14] sm:$0x1] }
  0x77   : > { %775 = vst [vmem:[#allocation2 + $0x7] sm:$0x1] %v774_v7 }
  0x78   : > { %800 = vsyncadd [#allocation3 + $0x7], 16 }
  0x79   : > { %1596 = dma.done.wait [#allocation3], 16 }
  0x7a   : > { %1597 = vsyncadd [#allocation3], 4294967280 }
  0x7b   : > { %1598 = dma.done.wait [#allocation3 + $0x1], 16 }
  0x7c   : > { %1599 = vsyncadd [#allocation3 + $0x1], 4294967280 }
  0x7d   : > { %1600 = dma.done.wait [#allocation3 + $0x2], 16 }
  0x7e   : > { %1601 = vsyncadd [#allocation3 + $0x2], 4294967280 }
  0x7f   : > { %1602 = dma.done.wait [#allocation3 + $0x3], 16 }
  0x80   : > { %1603 = vsyncadd [#allocation3 + $0x3], 4294967280 }
  0x81   : > { %1604 = dma.done.wait [#allocation3 + $0x4], 16 }
  0x82   : > { %1605 = vsyncadd [#allocation3 + $0x4], 4294967280 }
  0x83   : > { %1606 = dma.done.wait [#allocation3 + $0x5], 16 }
  0x84   : > { %1607 = vsyncadd [#allocation3 + $0x5], 4294967280 }
  0x85   : > { %1608 = dma.done.wait [#allocation3 + $0x6], 16 }
  0x86   : > { %1609 = vsyncadd [#allocation3 + $0x6], 4294967280 }
  0x87   : > { %1610 = dma.done.wait [#allocation3 + $0x7], 16 }
  0x88   : > { %1611 = vsyncadd [#allocation3 + $0x7], 4294967280 }
  0x89 PF: > { %p1398_p12 = scmp.ge.s32.totalorder %s1707_s9, 2 }
  0x8a   : > { %v1519_v8 = vld [vmem:[%s1769_s21 + $0x10] sm:$0xff] (!%p1398_p12)   ;;  %v1633_v9 = vmov (!%p1398_p12), 0.0   ;;  %v1520_v10 = vld [vmem:[%s1769_s21] sm:$0xff] (!%p1398_p12)   ;;  %v1521_v11 = vld [vmem:[%s1769_s21 + $0x18] sm:$0xff] (!%p1398_p12)   ;;  %vm1634_vm0 = vmmov (!%p1398_p12), 0   ;;  %s1399_s12 = sshll.u32 (!%p1398_p12), %s1707_s9, 3  ;;  %v953_v17 = vlaneseq (!%p1398_p12)  ;;  %s1900_s0 = scalar_lea.vmem (!%p1398_p12), %s1886_s3, %s1912_s10 }
  0x8b   : > { %821 = sbr.rel (%p1398_p12) target bundleno = 853 (0x355), region = 296  ;;  %1438 = vmatprep.subr.bf16.mxu0 (!%p1398_p12), %v1633_v9  ;;  %1446 = vmatprep.subr.bf16.mxu1 (!%p1398_p12), %v1633_v9  ;;  %v1522_v12 = vld [vmem:[%s1769_s21 + $0x8] sm:$0xff] (!%p1398_p12)   ;;  %s1809_s20 = scalar_lea.vmem (!%p1398_p12), %s1889_s6, %s1399_s12  ;;  %v832_v14 = vld [vmem:[#allocation2] sm:$0xff] (!%p1398_p12)  ;;  %vm854_vm1 = vcmask (!%p1398_p12), 261120   ;;  %v830_v19 = vld [vmem:[%s1900_s0] sm:$0x1] (!%p1398_p12) }
  0x8c   : > { %1439 = vmatpush3.bf16.msra.mxu0 (!%p1398_p12), %v1519_v8  ;;  %1442 = vmatprep.mubr.msk.bf16.mxu0 (!%p1398_p12), %vm1634_vm0, %v1633_v9  ;;  %v836_v13 = vld [vmem:[%s1809_s20] sm:$0xff] (!%p1398_p12)  ;;  %v833_v16 = vpack.c.bf16 (!%p1398_p12), %v832_v14, %v832_v14  ;;  %v954_v18 = vshrl.u32 (!%p1398_p12), %v953_v17, 7  ;;  %v831_v20 = vunpack.c.l.bf16 (!%p1398_p12), %v830_v19  ;;  %s1635_s23 = smov (!%p1398_p12), 32   ;;  %v1401_v34 = vld [vmem:[%s1809_s20 + $0x10] sm:$0xff] (!%p1398_p12)  ;;  %s1636_s10 = smov (!%p1398_p12), 96  }
  0x8d   : > { %1447 = vmatpush3.bf16.msra.mxu1 (!%p1398_p12), %v1520_v10  ;;  %1440 = vmatprep.subr.bf16.mxu0 (!%p1398_p12), %v1633_v9  ;;  %v841_v15 = vpack.c.bf16 (!%p1398_p12), %v836_v13, %v836_v13  ;;  %s990_s16 = scalar_lea.vmem (!%p1398_p12), %s1891_s8, %s1399_s12  ;;  %s1637_s13 = smov (!%p1398_p12), 64  }
  0x8e   : > { %1448 = vmatprep.subr.bf16.mxu1 (!%p1398_p12), %v1633_v9  ;;  %1450 = vmatprep.mubr.msk.bf16.mxu1 (!%p1398_p12), %vm1634_vm0, %v1633_v9  ;;  %v955_v21 = vsub.s32 (!%p1398_p12), 0, %v954_v18 }
  0x90   : > { %1441 = vmatpush3.bf16.msra.mxu0 (!%p1398_p12), %v1521_v11  ;;  %v956_v23 = vrot.slane (!%p1398_p12), %v831_v20, %v955_v21 }
  0x91   : > { %1449 = vmatpush3.bf16.msra.mxu1 (!%p1398_p12), %v1522_v12 }
  0x93   : > { %1443 = vmatmul.mubr.msk.bf16.vlgmr.msra.gmra.mrb[0].mxu0 %vm854_vm1, %v841_v15 }
  0x94   : > { %1451 = vmatmul.mubr.msk.bf16.vlgmr.msra.gmra.mrb[0].mxu1 %vm854_vm1, %v833_v16 }
 0x166   : > { %v892_v22 = vpop.f32.mrb[0].mxu0 }
 0x167   : > { %v947_v24 = vpop.f32.mrb[0].mxu1  ;;  %v1444_v25 = vpop.f32.mrb[1].mxu0 }
 0x168   : > { %v948_v26 = vadd.f32 %v947_v24, %v892_v22  ;;  %v1452_v27 = vpop.f32.mrb[1].mxu1  ;;  %v895_v28 = vpop.f32.mrb[2].mxu0 }
 0x169   : > { %v950_v29 = vpop.f32.mrb[2].mxu1  ;;  %v1445_v30 = vpop.f32.mrb[3].mxu0 }
 0x16a   : > { %v957_v31 = vadd.f32 %v956_v23, %v948_v26  ;;  %v1453_v32 = vpop.f32.mrb[3].mxu1 }
 0x16c   : > { %1523 = vtanh.f32 %v957_v31  ;;  %v1408_v35 = vmul.f32 -1.442695, %v957_v31 }
 0x16e   : > { %1525 = vpow2.f32 %v1408_v35 }
 0x176   : > { %v1524_v33 = vpop.eup %1523 }
 0x177   : > { %971 = vrot.lane.b32.xlu0 %v1524_v33, %s1635_s23 }
 0x178   : > { %v1526_v36 = vpop.eup %1525 }
 0x179   : > { %v961_v37 = vadd.f32 1.0, %v1526_v36 }
 0x17b   : > { %966 = vrot.lane.b32.xlu0 %v1401_v34, %s1635_s23  ;;  %1527 = vrcp.f32 %v961_v37 }
 0x185   : > { %v1528_v38 = vpop.eup %1527 }
 0x1e9   : > { %v972_v39 = vpop.permute.xlu0 %971 }
 0x1ea   : > { %v974_v40 = vmul.f32 %v1528_v38, %v972_v39 }
 0x1ec   : > { %976 = vrot.lane.b32.xlu1 %v974_v40, %s1635_s23 }
 0x1ed   : > { %v967_v41 = vpop.permute.xlu0 %966 }
 0x1ee   : > { %v969_v42 = vmul.f32 %v1528_v38, %v967_v41 }
 0x25e   : > { %v977_v43 = vpop.permute.xlu1 %976 }
 0x25f   : > { %v979_v44 = vadd.f32 %v977_v43, %v969_v42 }
 0x261   : > { %1529 = vtanh.f32 %v979_v44 }
 0x26b   : > { %v1530_v45 = vpop.eup %1529 }
 0x26c   : > { %982 = vrot.lane.b32.xlu1 %v1530_v45, %s1635_s23 }
 0x270   : > { %993 = vrot.lane.b32.xlu1 %v979_v44, %s1636_s10 }
 0x2de   : > { %v983_v46 = vpop.permute.xlu1 %982 }
 0x2df   : > { %v985_v47 = vmul.f32 %v1528_v38, %v983_v46 }
 0x2e1   : > { %987 = vrot.lane.b32.xlu0 %v985_v47, %s1637_s13 }
 0x2e2   : > { %v994_v48 = vpop.permute.xlu1 %993 }
 0x2e3   : > { %1410 = vst.msk [vmem:[%s990_s16 + $0x10] sm:$0xff] %vm854_vm1, %v994_v48 }
 0x353   : > { %v988_v49 = vpop.permute.xlu0 %987 }
 0x354   : > { %991 = vst.msk [vmem:[%s990_s16] sm:$0xff] %vm854_vm1, %v988_v49  ;;  %998 = vst.msk [vmem:[#allocation2] sm:$0xff] %vm854_vm1, %v988_v49 }
 0x355 PF: > { %p1411_p13 = scmp.lt.s32.totalorder %s1707_s9, 2 }
 0x356   : > { %v1531_v50 = vld [vmem:[%s1887_s4] sm:$0xff] (!%p1411_p13)   ;;  %v1638_v51 = vmov (!%p1411_p13), 0.0   ;;  %v1532_v52 = vld [vmem:[%s1887_s4 + $0x8] sm:$0xff] (!%p1411_p13)   ;;  %vm1639_vm2 = vmmov (!%p1411_p13), 0   ;;  %vm1027_vm3 = vcmask (!%p1411_p13), 261120   ;;  %v1011_v55 = vlaneseq (!%p1411_p13)  ;;  %s1901_s25 = scalar_lea.vmem (!%p1411_p13), [#allocation7], %s1756_s26 }
 0x357   : > { %1002 = sbr.rel (%p1411_p13) target bundleno = 1078 (0x436), region = 300  ;;  %1454 = vmatprep.subr.bf16.mxu0 (!%p1411_p13), %v1638_v51  ;;  %1458 = vmatprep.mubr.msk.bf16.mxu0 (!%p1411_p13), %vm1639_vm2, %v1638_v51  ;;  %v1009_v57 = vld [vmem:[%s1888_s5] sm:$0x1] (!%p1411_p13) }
 0x358   : > { %1455 = vmatpush3.bf16.msra.mxu0 (!%p1411_p13), %v1531_v50  ;;  %v1012_v56 = vshrl.u32 (!%p1411_p13), %v1011_v55, 7  ;;  %v1010_v58 = vunpack.c.l.bf16 (!%p1411_p13), %v1009_v57 }
 0x359   : > { %1456 = vmatprep.subr.bf16.mxu0 (!%p1411_p13), %v1638_v51 }
 0x35a   : > { %v1013_v59 = vsub.s32 (!%p1411_p13), 0, %v1012_v56 }
 0x35b   : > { %v1003_v53 = vld [vmem:[#allocation2] sm:$0xff] (!%p1411_p13) }
 0x35c   : > { %v1004_v54 = vpack.c.bf16 (!%p1411_p13), %v1003_v53, %v1003_v53  ;;  %1457 = vmatpush3.bf16.msra.mxu0 (!%p1411_p13), %v1532_v52  ;;  %v1014_v60 = vrot.slane (!%p1411_p13), %v1010_v58, %v1013_v59 }
 0x35f   : > { %1459 = vmatmul.mubr.msk.bf16.vlgmr.msra.gmra.mrb[0].mxu0 %vm1027_vm3, %v1004_v54 }
 0x432   : > { %v1065_v61 = vpop.f32.mrb[0].mxu0 }
 0x433   : > { %v1066_v62 = vadd.f32 %v1065_v61, %v1014_v60  ;;  %v1460_v63 = vpop.f32.mrb[1].mxu0 }
 0x434   : > { %v1068_v0 = vpop.f32.mrb[2].mxu0 }
 0x435   : > { %1071 = vst [vmem:[%s1901_s25] sm:$0xff] %v1066_v62  ;;  %v1461_v1 = vpop.f32.mrb[3].mxu0 }
 0x436 PF: > { %s1416_s0 = sadd.s32 4294967294, %s1707_s9  ;;  %s1902_s23 = scalar_lea.vmem [#allocation7], %s1756_s26 }
 0x437   : > { %p1081_p1 = scmp.gt.s32.totalorder %s1416_s0, 0  ;;  %s1089_s10 = sshll.u32 %s1902_s23, 4  ;;  %s1843_s10 = int_to_ptr.vmem [resolvable:$true] %s1089_s10 }
 0x438   : > { %s1903_s14 = sand.u32 1, %s1622_s28   ;;  %s1548_s12 = scalar_lea.vmem %s1843_s10, 128 }
 0x439   : > { %s1914_s0 = smov (!%p1081_p1, %s1416_s0), 0  ;;  %s1073_s22 = scalar_lea.sflag [#allocation5], %s1903_s14 }
 0x43a   : > { %s1417_s24 = sshll.u32 %s1914_s0, 7  ;;  %p1549_p2 = scmp.ne.s32.totalorder %s1843_s10, %s1548_s12 }
 0x43b   : > { %s1087_s13 = scalar_lea.hbm %s1890_s7, %s1417_s24  ;;  %s1640_s9 = smov [#allocation7]  }
 0x43c   : > { %p1550_p3 = pnand %p1549_p2, %p1720_p5  ;;  %s1552_s26 = sshll.u32 %s1640_s9, 4  ;;  %s1553_s26 = int_to_ptr.vmem [resolvable:$false] %s1552_s26 }
 0x43d   : > { %s1554_s19 = scalar_lea.vmem %s1553_s26, 256  ;;  %p1555_p6 = scmp.lt.s32.totalorder %s1843_s10, %s1553_s26 }
 0x43e   : > { %p1551_p4 = pneg %p1550_p3  ;;  %p1556_p7 = scmp.lt.s32.totalorder %s1554_s19, %s1548_s12 }
 0x440   : > { %p1557_p8 = por %p1556_p7, %p1555_p6 }
 0x442   : > { %p1558_p10 = pnand %p1557_p8, %p1551_p4 }
 0x444   : > { %1561 = shalt.err (!%p1558_p10)
}
 0x445   : > { %s1562_s20 = scalar_lea.hbm %s1087_s13, 128  ;;  %s1566_s0 = scalar_lea.hbm %s1890_s7, 128 }
 0x446   : > { %p1563_p0 = scmp.ne.s32.totalorder %s1087_s13, %s1562_s20  ;;  %p1567_p13 = scmp.lt.u32.totalorder %s1087_s13, %s1890_s7 }
 0x447   : > { %p1568_p1 = scmp.lt.u32.totalorder %s1566_s0, %s1562_s20  ;;  %p1570_p3 = scmp.lt.u32.totalorder %s1562_s20, %s1087_s13 }
 0x448   : > { %p1564_p11 = pnand %p1563_p0, %p1720_p5 }
 0x449   : > { %p1569_p2 = por %p1568_p1, %p1567_p13 }
 0x44a   : > { %p1565_p12 = pneg %p1564_p11 }
 0x44b   : > { %p1571_p6 = por %p1570_p3, %p1569_p2 }
 0x44d   : > { %p1572_p4 = pnand %p1571_p6, %p1565_p12 }
 0x44f   : > { %1575 = shalt.err (!%p1572_p4)
}
 0x450   : > { %1466 = dma.vmem_to_hbm [thread:$0]  (%p1720_p5), %s1843_s10, 128, %s1087_s13, %s1073_s22  }
 0x451 PF: > { %p1478_p7 = scmp.ge.s32.totalorder %s1630_s30, 2  ;;  %s1107_s18 = sand.u32 1, %s1618_s27  }
 0x452   : > { %s1108_s16 = scalar_lea.sflag [#allocation5], %s1107_s18 }
 0x453   : > { %p1473_p8 = pnand %p1478_p7, %p1725_p9 }
 0x455   : > { %1613 = dma.done.wait (!%p1473_p8), %s1108_s16, 128  }
 0x456   : > { %1615 = vsyncadd (!%p1473_p8), %s1108_s16, 4294967168  ;;  %s1904_s14 = sld [smem:[#allocation26_spill]]  ;;  %p20_p10 = scmp.ge.s32.totalorder %s1711_s11, 5  }
 0x457   : > { %s1905_s27 = smov %s1622_s28  ;;  %s1906_s28 = smov %s1626_s29 }
 0x458   : > { %s1908_s30 = smov %s1711_s11  ;;  %22 = sbr.rel (!%p20_p10) target bundleno = 6 (0x6), region = 466 }
 0x45c   : > { %s1907_s29 = smov %s1904_s14 }
 0x45f   :  { %1113 = vsyncpa [#allocation5], 1 }
 0x460   :  { %1115 = vsyncpa [#allocation5 + $0x1], 1 }
 0x461   :  { %1116 = vsyncpa [#allocation6], 1 }
 0x462   :  { %1118 = vsyncpa [#allocation6 + $0x1], 1 }
 0x463   :  { %1119 = vsyncmov [#allocation3] }
 0x466   :  { %s1120_s30 = vpop.sfrf %1119 }
 0x467   :  { %p1420_p5 = scmp.ne.s32.totalorder %s1120_s30, 0 }
 0x469   :  { %1124 = shalt.err (%p1420_p5)  }
 0x46a   :  { %1126 = vsyncmov [#allocation3 + $0x1] }
 0x46d   :  { %s1127_s15 = vpop.sfrf %1126 }
 0x46e   :  { %p1421_p9 = scmp.ne.s32.totalorder %s1127_s15, 0 }
 0x470   :  { %1131 = shalt.err (%p1421_p9)  }
 0x471   :  { %1133 = vsyncmov [#allocation3 + $0x2] }
 0x474   :  { %s1134_s17 = vpop.sfrf %1133 }
 0x475   :  { %p1422_p0 = scmp.ne.s32.totalorder %s1134_s17, 0 }
 0x477   :  { %1138 = shalt.err (%p1422_p0)  }
 0x478   :  { %1140 = vsyncmov [#allocation3 + $0x3] }
 0x47b   :  { %s1141_s10 = vpop.sfrf %1140 }
 0x47c   :  { %p1423_p11 = scmp.ne.s32.totalorder %s1141_s10, 0 }
 0x47e   :  { %1145 = shalt.err (%p1423_p11)  }
 0x47f   :  { %1147 = vsyncmov [#allocation3 + $0x4] }
 0x482   :  { %s1148_s1 = vpop.sfrf %1147 }
 0x483   :  { %p1424_p12 = scmp.ne.s32.totalorder %s1148_s1, 0 }
 0x485   :  { %1152 = shalt.err (%p1424_p12)  }
 0x486   :  { %1154 = vsyncmov [#allocation3 + $0x5] }
 0x489   :  { %s1155_s2 = vpop.sfrf %1154 }
 0x48a   :  { %p1425_p13 = scmp.ne.s32.totalorder %s1155_s2, 0 }
 0x48c   :  { %1159 = shalt.err (%p1425_p13)  }
 0x48d   :  { %1161 = vsyncmov [#allocation3 + $0x6] }
 0x490   :  { %s1162_s3 = vpop.sfrf %1161 }
 0x491   :  { %p1426_p1 = scmp.ne.s32.totalorder %s1162_s3, 0 }
 0x493   :  { %1166 = shalt.err (%p1426_p1)  }
 0x494   :  { %1168 = vsyncmov [#allocation3 + $0x7] }
 0x497   :  { %s1169_s4 = vpop.sfrf %1168 }
 0x498   :  { %p1427_p2 = scmp.ne.s32.totalorder %s1169_s4, 0 }
 0x49a   :  { %1173 = shalt.err (%p1427_p2)  }

</bundles_post_ra>
